<compile_context>
chip_gen: v5e
topology: v5e:2x2
jax: 0.10.0
libtpu: 0.0.40
codegen_flags: <defaults>
</compile_context>

<pallas_src>
import functools

import jax
import jax.numpy as jnp
from jax.experimental import pallas as pl
from jax.experimental.pallas import tpu as pltpu

LANE = 128
SUBLANE = 8
NEG_BIG = -1e30  # padded final-layer logits -> exp underflows to exactly 0


def _round_up(x, m):
    return (x + m - 1) // m * m


def _vmem_capacity_bytes():
    """Physical VMEM of the current TPU generation, with a conservative fallback."""
    try:
        info = pltpu.get_tpu_info()
        cap = getattr(info, "vmem_capacity_bytes", None)
        if cap:
            return int(cap)
    except Exception:
        pass
    return 64 * 1024 * 1024  # v7x-sized conservative default


def _fused_mlp_kernel(x_ref, *refs, num_layers, compute_dtype):
    """Fused MLP for one batch tile.

    refs = (w0, b0, w1, b1, ..., w_{L-1}, b_{L-1}, o_ref)
    Activations are chained as values (never leave VMEM/vregs).
    """
    o_ref = refs[-1]
    params = refs[:-1]

    h = x_ref[...]  # (TILE_M, in_pad) float32
    for i in range(num_layers):
        w = params[2 * i][...]          # (k_pad, n_pad), compute_dtype (bf16 by default)
        b = params[2 * i + 1][...]      # (1, n_pad), float32
        y = jnp.dot(h.astype(compute_dtype), w,
                    preferred_element_type=jnp.float32)
        y = y + b                       # f32 bias add, broadcast over batch rows
        if i == num_layers - 1:
            # Numerically stable softmax over lanes.  Padded lanes carry a
            # NEG_BIG bias, so exp() underflows to 0 and they do not perturb
            # the normalization.  Exact divide: rows sum to 1 to f32 precision.
            m = jnp.max(y, axis=-1, keepdims=True)
            e = jnp.exp(y - m)
            s = jnp.sum(e, axis=-1, keepdims=True)
            h = e / s
        else:
            # sigmoid(y) == 0.5*tanh(0.5*y)+0.5 -> single EUP op per element.
            h = 0.5 * jnp.tanh(0.5 * y) + 0.5
    o_ref[...] = h.astype(o_ref.dtype)


def _fused_mlp_forward(x_pad, weights, biases, *, tile_m, compute_dtype):
    """x_pad: (batch_pad, in_pad) float32, batch_pad a multiple of SUBLANE."""
    batch_pad, in_pad = x_pad.shape
    num_layers = len(weights)
    out_pad = weights[-1].shape[1]
    grid = (pl.cdiv(batch_pad, tile_m),)

    in_specs = [pl.BlockSpec((tile_m, in_pad), lambda i: (i, 0))]
    flat_params = []
    for w, b in zip(weights, biases):
        # Whole-array VMEM residents; constant index_map -> fetched once.
        # TODO(synk): pipeline_mode=pl.Buffered(1) on these specs would drop the
        # default double-buffer (footprint below budgets 2x instead); and for a
        # layer with huge fan_in, tile K with an in-kernel pltpu.emit_pipeline
        # over weight K-slabs + an f32 accumulator instead of full residency.
        in_specs.append(pl.BlockSpec(w.shape, lambda i: (0, 0)))
        in_specs.append(pl.BlockSpec(b.shape, lambda i: (0, 0)))
        flat_params.extend([w, b])
    out_specs = pl.BlockSpec((tile_m, out_pad), lambda i: (i, 0))

    # ---- cost estimate -------------------------------------------------
    nbytes = lambda a: int(a.size) * int(a.dtype.itemsize)
    flops = 0
    transcendentals = 0
    bytes_accessed = nbytes(x_pad) + batch_pad * out_pad * 4
    for li, (w, b) in enumerate(zip(weights, biases)):
        k, n = w.shape
        flops += 2 * batch_pad * k * n
        if li == num_layers - 1:
            transcendentals += batch_pad * n + batch_pad   # exp per elem + recip per row
        else:
            transcendentals += batch_pad * n               # one tanh per elem
        bytes_accessed += nbytes(w) + nbytes(b)
    cost = pl.CostEstimate(flops=flops, transcendentals=transcendentals,
                           bytes_accessed=bytes_accessed)

    # ---- generation-aware VMEM budget (64 MiB v7x, 128 MiB v5e/v6e) ----
    vmem_limit = int(0.85 * _vmem_capacity_bytes())

    kernel = functools.partial(_fused_mlp_kernel,
                               num_layers=num_layers,
                               compute_dtype=compute_dtype)
    return pl.pallas_call(
        kernel,
        out_shape=jax.ShapeDtypeStruct((batch_pad, out_pad), jnp.float32),
        grid=grid,
        in_specs=in_specs,
        out_specs=out_specs,
        compiler_params=pltpu.CompilerParams(
            dimension_semantics=("parallel",),
            vmem_limit_bytes=vmem_limit),
        cost_estimate=cost,
    )(x_pad, *flat_params)


class MLP:
    """JAX/Pallas port of neuralpp MLP (Linear+sigmoid stack, softmax last layer).

    Parameters are stored lane-padded (features rounded up to 128) so the
    fused kernel runs lane-dense.  Weights are stored in `compute_dtype`
    (bf16 by default) for MXU throughput; accumulation and activations
    are float32.
    """

    def __init__(self, *layer_sizes, key, compute_dtype=jnp.bfloat16):
        self.layer_sizes = list(layer_sizes)
        assert len(self.layer_sizes) > 0
        assert all(isinstance(s, int) and s > 0 for s in self.layer_sizes)
        self.compute_dtype = compute_dtype
        self.num_layers = len(self.layer_sizes) - 1
        self.last_layer_index = self.num_layers - 1

        self.weights = []  # padded (in_pad, out_pad), compute_dtype
        self.biases = []   # padded (1, out_pad), float32
        for i, (fan_in, fan_out) in enumerate(
            zip(self.layer_sizes[:-1], self.layer_sizes[1:])
        ):
            kw, kb, key = jax.random.split(key, 3)
            bound = 1.0 / float(fan_in) ** 0.5  # torch.nn.Linear default init
            w = jax.random.uniform(kw, (fan_in, fan_out), jnp.float32, -bound, bound)
            b = jax.random.uniform(kb, (1, fan_out), jnp.float32, -bound, bound)

            in_pad = _round_up(fan_in, LANE)
            out_pad = _round_up(fan_out, LANE)
            w_pad = jnp.zeros((in_pad, out_pad), jnp.float32).at[:fan_in, :fan_out].set(w)
            if i == self.num_layers - 1:
                # padded logits of the softmax layer must vanish after exp()
                b_fill = jnp.full((1, out_pad), NEG_BIG, jnp.float32)
            else:
                b_fill = jnp.zeros((1, out_pad), jnp.float32)
            b_pad = b_fill.at[:, :fan_out].set(b)

            self.weights.append(w_pad.astype(compute_dtype))
            self.biases.append(b_pad)

    # ---- batch tile selection (VMEM-budget sweep) -----------------------
    def _choose_tile_m(self, batch_pad):
        nbytes = lambda a: int(a.size) * int(a.dtype.itemsize)
        param_bytes = sum(nbytes(w) + nbytes(b)
                          for w, b in zip(self.weights, self.biases))
        in_pad = self.weights[0].shape[0]
        out_pad = self.weights[-1].shape[1]
        max_pad = max([in_pad] + [w.shape[1] for w in self.weights])
        vmem_budget = int(0.85 * _vmem_capacity_bytes())

        tile_m = SUBLANE
        for cap in (1024, 512, 256, 128, 64, 32, 16, SUBLANE):
            cand = min(cap, batch_pad)
            footprint = (2 * param_bytes                 # params are double-buffered by default
                         + 2 * cand * in_pad * 4         # double-buffered input tile
                         + 2 * cand * out_pad * 4        # double-buffered output tile
                         + 4 * cand * max_pad * 4)       # in-flight activations / spill slack
            if footprint <= vmem_budget or cap == SUBLANE:
                tile_m = cand
                break

        # Single-tile medium batches: split in two so both v7x TensorCores work.
        if batch_pad >= 128 and batch_pad <= tile_m:
            tile_m = _round_up((batch_pad + 1) // 2, SUBLANE)
        return tile_m

    def __call__(self, x):
        x = x.astype(jnp.float32)
        if x.shape[-1] != self.layer_sizes[0]:
            x = x.reshape(-1, self.layer_sizes[0])
        if self.num_layers == 0:
            return x

        lead_shape = x.shape[:-1]
        in_dim = self.layer_sizes[0]
        out_dim = self.layer_sizes[-1]
        x2d = x.reshape(-1, in_dim)
        batch = x2d.shape[0]

        in_pad = self.weights[0].shape[0]
        batch_pad = _round_up(batch, SUBLANE)
        # Cheap padding: feature axis to lane multiple, batch only to a sublane
        # multiple (grid uses cdiv; partial last block is masked on write).
        x_pad = jnp.pad(x2d, ((0, batch_pad - batch), (0, in_pad - in_dim)))

        tile_m = self._choose_tile_m(batch_pad)

        y_pad = _fused_mlp_forward(x_pad, self.weights, self.biases,
                                   tile_m=tile_m,
                                   compute_dtype=self.compute_dtype)
        y = y_pad[:batch, :out_dim]
        return y.reshape(lead_shape + (out_dim,))


if __name__ == "__main__":
    key = jax.random.PRNGKey(0)
    kx, kp = jax.random.split(key)

    layer_sizes = (32, 64, 16)
    batch = 8
    x = jax.random.normal(kx, (batch, layer_sizes[0]), jnp.float32)

    mlp = MLP(*layer_sizes, key=kp)
    out = jax.block_until_ready(mlp(x))

    # Pure-JAX reference using the unpadded slices of the same (bf16-stored) parameters.
    ref = x
    for i in range(mlp.num_layers):
        fan_in, fan_out = layer_sizes[i], layer_sizes[i + 1]
        w = mlp.weights[i][:fan_in, :fan_out].astype(jnp.float32)
        b = mlp.biases[i][:, :fan_out]
        y = ref @ w + b
        ref = jax.nn.softmax(y, axis=-1) if i == mlp.last_layer_index else jax.nn.sigmoid(y)

    assert out.shape == (batch, layer_sizes[-1])
    assert bool(jnp.all(jnp.isfinite(out)))
    # Tolerance accounts for bf16 activation/matmul rounding vs the f32 reference.
    assert jnp.allclose(out, ref, atol=1e-2, rtol=1e-2), float(jnp.max(jnp.abs(out - ref)))
    # Exact softmax normalization: rows sum to 1 to f32 precision.
    assert jnp.allclose(jnp.sum(out, axis=-1), 1.0, atol=1e-4)

    print("KERNEL_OK")
</pallas_src>

<mosaic_0001>
module attributes {stable_mosaic.version = 11 : i64} {
  func.func @_fused_mlp_kernel(%arg0: i32, %arg1: memref<8x128xf32, #tpu.memory_space<vmem>>, %arg2: memref<128x128xbf16, #tpu.memory_space<vmem>>, %arg3: memref<1x128xf32, #tpu.memory_space<vmem>>, %arg4: memref<128x128xbf16, #tpu.memory_space<vmem>>, %arg5: memref<1x128xf32, #tpu.memory_space<vmem>>, %arg6: memref<8x128xf32, #tpu.memory_space<vmem>>) attributes {dimension_semantics = [#tpu.dimension_semantics<parallel>], iteration_bounds = array<i64: 1>, scalar_prefetch = 0 : i64, scratch_operands = 0 : i64, tpu.core_type = #tpu.core_type<tc>, window_params = [{transform_indices = @transform_0, window_bounds = array<i64: 8, 128>}, {pipeline_mode = #tpu.pipeline_mode<synchronous>, transform_indices = @transform_1, window_bounds = array<i64: 128, 128>}, {pipeline_mode = #tpu.pipeline_mode<synchronous>, transform_indices = @transform_2, window_bounds = array<i64: 1, 128>}, {pipeline_mode = #tpu.pipeline_mode<synchronous>, transform_indices = @transform_3, window_bounds = array<i64: 128, 128>}, {pipeline_mode = #tpu.pipeline_mode<synchronous>, transform_indices = @transform_4, window_bounds = array<i64: 1, 128>}, {transform_indices = @transform_5, window_bounds = array<i64: 8, 128>}]} {
    %c0 = arith.constant 0 : index
    %c0_0 = arith.constant 0 : index
    %0 = vector.load %arg1[%c0, %c0_0] : memref<8x128xf32, #tpu.memory_space<vmem>>, vector<8x128xf32>
    %c0_1 = arith.constant 0 : index
    %c0_2 = arith.constant 0 : index
    %1 = vector.load %arg2[%c0_1, %c0_2] : memref<128x128xbf16, #tpu.memory_space<vmem>>, vector<128x128xbf16>
    %c0_3 = arith.constant 0 : index
    %c0_4 = arith.constant 0 : index
    %2 = vector.load %arg3[%c0_3, %c0_4] : memref<1x128xf32, #tpu.memory_space<vmem>>, vector<1x128xf32>
    %3 = arith.truncf %0 : vector<8x128xf32> to vector<8x128xbf16>
    %cst = arith.constant dense<0.000000e+00> : vector<8x128xf32>
    %4 = tpu.matmul %3, %1, %cst {dimension_numbers = #tpu.dot_dimension_numbers<[1], [0], [0], [1], [0, 0, 1, 1], [], []>} : vector<8x128xbf16>, vector<128x128xbf16>, vector<8x128xf32> -> vector<8x128xf32>
    %5 = vector.broadcast %2 : vector<1x128xf32> to vector<8x128xf32>
    %6 = arith.addf %4, %5 : vector<8x128xf32>
    %cst_5 = arith.constant 5.000000e-01 : f32
    %7 = vector.broadcast %cst_5 : f32 to vector<8x128xf32>
    %8 = arith.mulf %7, %6 : vector<8x128xf32>
    %9 = math.tanh %8 : vector<8x128xf32>
    %cst_6 = arith.constant 5.000000e-01 : f32
    %10 = vector.broadcast %cst_6 : f32 to vector<8x128xf32>
    %11 = arith.mulf %10, %9 : vector<8x128xf32>
    %cst_7 = arith.constant 5.000000e-01 : f32
    %12 = vector.broadcast %cst_7 : f32 to vector<8x128xf32>
    %13 = arith.addf %11, %12 : vector<8x128xf32>
    %c0_8 = arith.constant 0 : index
    %c0_9 = arith.constant 0 : index
    %14 = vector.load %arg4[%c0_8, %c0_9] : memref<128x128xbf16, #tpu.memory_space<vmem>>, vector<128x128xbf16>
    %c0_10 = arith.constant 0 : index
    %c0_11 = arith.constant 0 : index
    %15 = vector.load %arg5[%c0_10, %c0_11] : memref<1x128xf32, #tpu.memory_space<vmem>>, vector<1x128xf32>
    %16 = arith.truncf %13 : vector<8x128xf32> to vector<8x128xbf16>
    %cst_12 = arith.constant dense<0.000000e+00> : vector<8x128xf32>
    %17 = tpu.matmul %16, %14, %cst_12 {dimension_numbers = #tpu.dot_dimension_numbers<[1], [0], [0], [1], [0, 0, 1, 1], [], []>} : vector<8x128xbf16>, vector<128x128xbf16>, vector<8x128xf32> -> vector<8x128xf32>
    %18 = vector.broadcast %15 : vector<1x128xf32> to vector<8x128xf32>
    %19 = arith.addf %17, %18 : vector<8x128xf32>
    %cst_13 = arith.constant dense<0xFF800000> : vector<8xf32>
    %20 = vector.multi_reduction <maximumf>, %19, %cst_13 [1] : vector<8x128xf32> to vector<8xf32>
    %21 = vector.shape_cast %20 : vector<8xf32> to vector<8x1xf32>
    %22 = vector.broadcast %21 : vector<8x1xf32> to vector<8x128xf32>
    %23 = arith.subf %19, %22 : vector<8x128xf32>
    %24 = math.exp %23 : vector<8x128xf32>
    %cst_14 = arith.constant dense<0.000000e+00> : vector<8xf32>
    %25 = vector.multi_reduction <add>, %24, %cst_14 [1] : vector<8x128xf32> to vector<8xf32>
    %26 = vector.shape_cast %25 : vector<8xf32> to vector<8x1xf32>
    %27 = vector.broadcast %26 : vector<8x1xf32> to vector<8x128xf32>
    %28 = arith.divf %24, %27 : vector<8x128xf32>
    %c0_15 = arith.constant 0 : index
    %c0_16 = arith.constant 0 : index
    %29 = vector.load %arg6[%c0_15, %c0_16] : memref<8x128xf32, #tpu.memory_space<vmem>>, vector<8x128xf32>
    tpu.vector_store %arg6[%c0_15, %c0_16], %28 {strides = array<i32>} : memref<8x128xf32, #tpu.memory_space<vmem>>, vector<8x128xf32>,
    return
  }
  func.func @transform_0(%arg0: i32) -> (i32, i32) {
    %c0_i32 = arith.constant 0 : i32
    %c0_i32_0 = arith.constant 0 : i32
    return %arg0, %c0_i32 : i32, i32
  }
  func.func @transform_1(%arg0: i32) -> (i32, i32) {
    %c0_i32 = arith.constant 0 : i32
    %c0_i32_0 = arith.constant 0 : i32
    %c0_i32_1 = arith.constant 0 : i32
    return %c0_i32, %c0_i32_0 : i32, i32
  }
  func.func @transform_2(%arg0: i32) -> (i32, i32) {
    %c0_i32 = arith.constant 0 : i32
    %c0_i32_0 = arith.constant 0 : i32
    %c0_i32_1 = arith.constant 0 : i32
    return %c0_i32, %c0_i32_0 : i32, i32
  }
  func.func @transform_3(%arg0: i32) -> (i32, i32) {
    %c0_i32 = arith.constant 0 : i32
    %c0_i32_0 = arith.constant 0 : i32
    %c0_i32_1 = arith.constant 0 : i32
    return %c0_i32, %c0_i32_0 : i32, i32
  }
  func.func @transform_4(%arg0: i32) -> (i32, i32) {
    %c0_i32 = arith.constant 0 : i32
    %c0_i32_0 = arith.constant 0 : i32
    %c0_i32_1 = arith.constant 0 : i32
    return %c0_i32, %c0_i32_0 : i32, i32
  }
  func.func @transform_5(%arg0: i32) -> (i32, i32) {
    %c0_i32 = arith.constant 0 : i32
    %c0_i32_0 = arith.constant 0 : i32
    return %arg0, %c0_i32 : i32, i32
  }
}

</mosaic_0001>

<bundles_post_ra>
// kernel: tpu_custom_call.1
= control target key start
LH: loop header
LB: loop body
LE: loop exit
PB: predicated region body
PF: predicated region fallthrough
CT: control target
= control target key end

     0   :  { %10 = vsyncpa [#allocation3], 0  ;;  %s526_s0 = inlined_call_operand.hbm [shape: f32[8,128], index: 0, kind: input, shape index: {}]   ;;  %s527_s1 = inlined_call_operand.hbm [shape: bf16[128,128], index: 1, kind: input, shape index: {}]   ;;  %s528_s2 = inlined_call_operand.vmem [shape: f32[1,128], index: 2, kind: input, shape index: {}]   ;;  %s529_s3 = inlined_call_operand.hbm [shape: bf16[128,128], index: 3, kind: input, shape index: {}]   ;;  %s530_s4 = inlined_call_operand.vmem [shape: f32[1,128], index: 4, kind: input, shape index: {}]   ;;  %s531_s5 = inlined_call_operand.hbm [shape: f32[8,128], index: 5, kind: output, shape index: {}]  }
   0x1   :  { %11 = vsyncpa [#allocation6], 0  ;;  %s28_s20 = sshll.u32 %s527_s1, 4  ;;  %s29_s20 = int_to_ptr.hbm [resolvable:$true] %s28_s20 }
   0x2   :  { %12 = vsyncpa [#allocation4], 0  ;;  %s472_s21 = smov [#allocation5]   ;;  %s18_s25 = sshll.u32 %s526_s0, 4  ;;  %s19_s25 = int_to_ptr.hbm [resolvable:$true] %s18_s25 }
   0x3   :  { %s30_s22 = sshll.u32 %s472_s21, 4  ;;  %s473_s26 = smov 64   ;;  %s31_s22 = int_to_ptr.vmem [resolvable:$true] %s30_s22 }
   0x4   :  { %s474_s27 = smov 4   ;;  %s475_s28 = smov [#allocation2]  }
   0x5   :  { %36 = dma.hbm_to_vmem [thread:$0]  %s29_s20, 1024, %s31_s22, [#allocation6], %s473_s26, %s473_s26, %s474_s27  }
   0x6   :  { %s20_s29 = sshll.u32 %s475_s28, 4  ;;  %s43_s7 = sshll.u32 %s529_s3, 4  ;;  %s21_s29 = int_to_ptr.vmem [resolvable:$true] %s20_s29  ;;  %s44_s7 = int_to_ptr.hbm [resolvable:$true] %s43_s7 }
   0x7   :  { %23 = dma.hbm_to_vmem [thread:$0]  %s19_s25, 128, %s21_s29, [#allocation3]  }
   0x8   :  { %s476_s1 = smov [#allocation7]  }
   0x9   :  { %s45_s8 = sshll.u32 %s476_s1, 4  ;;  %s46_s8 = int_to_ptr.vmem [resolvable:$true] %s45_s8 }
   0xa   :  { %51 = dma.hbm_to_vmem [thread:$0]  %s44_s7, 1024, %s46_s8, [#allocation6], %s473_s26, %s473_s26, %s474_s27  }
   0xb   :  { %466 = dma.done.wait [#allocation3], 128  }
   0xc   :  { %467 = vsyncadd [#allocation3], 4294967168 }
   0xd   :  { %468 = dma.done.wait [#allocation6], 2048  }
   0xe   :  { %469 = vsyncadd [#allocation6], 4294965248  ;;  %v347_v0 = vld [vmem:[#allocation5 + $0x38] sm:$0xff]  ;;  %v346_v1 = vld [vmem:[#allocation5 + $0x30] sm:$0xff]  ;;  %s265_s13 = sshll.u32 %s531_s5, 4  ;;  %s266_s13 = int_to_ptr.hbm [resolvable:$true] %s265_s13 }
   0xf   :  { %136 = vmatpush.bf16.msra.mxu0 %v347_v0  ;;  %v355_v2 = vld [vmem:[#allocation7 + $0x38] sm:$0xff]  ;;  %v354_v3 = vld [vmem:[#allocation7 + $0x30] sm:$0xff]  ;;  %v345_v4 = vld [vmem:[#allocation5 + $0x28] sm:$0xff] }
  0x10   :  { %222 = vmatpush.bf16.msra.mxu1 %v355_v2  ;;  %v353_v5 = vld [vmem:[#allocation7 + $0x28] sm:$0xff]  ;;  %v344_v6 = vld [vmem:[#allocation5 + $0x20] sm:$0xff]  ;;  %v343_v8 = vld [vmem:[#allocation5 + $0x18] sm:$0xff] }
  0x11   :  { %v352_v7 = vld [vmem:[#allocation7 + $0x20] sm:$0xff]  ;;  %v342_v9 = vld [vmem:[#allocation5 + $0x10] sm:$0xff]  ;;  %v341_v10 = vld [vmem:[#allocation5 + $0x8] sm:$0xff] }
  0x12   :  { %v340_v11 = vld [vmem:[#allocation5] sm:$0xff]  ;;  %v66_v12 = vld [vmem:[#allocation2] sm:$0xff]  ;;  %v350_v15 = vld [vmem:[#allocation7 + $0x10] sm:$0xff] }
  0x13   :  { %137 = vmatpush.bf16.msra.mxu0 %v346_v1  ;;  %v84_v13 = vpack.c.bf16 %v66_v12, %v66_v12  ;;  %v351_v14 = vld [vmem:[#allocation7 + $0x18] sm:$0xff]  ;;  %v349_v16 = vld [vmem:[#allocation7 + $0x8] sm:$0xff]  ;;  %v348_v17 = vld [vmem:[#allocation7] sm:$0xff] }
  0x14   :  { %223 = vmatpush.bf16.msra.mxu1 %v354_v3  ;;  %v362_v18 = vld [vmem:[%s528_s2] ss:$0 sm:$0xff]  ;;  %s477_s2 = smov [#allocation8]  }
  0x15   :  { %v363_v27 = vld [vmem:[%s530_s4] ss:$0 sm:$0xff]  ;;  %s263_s4 = sshll.u32 %s477_s2, 4  ;;  %s264_s4 = int_to_ptr.vmem [resolvable:$true] %s263_s4 }
  0x17   :  { %138 = vmatpush.bf16.msra.mxu0 %v345_v4 }
  0x18   :  { %224 = vmatpush.bf16.msra.mxu1 %v353_v5 }
  0x1b   :  { %139 = vmatpush.bf16.msra.mxu0 %v344_v6 }
  0x1c   :  { %225 = vmatpush.bf16.msra.mxu1 %v352_v7 }
  0x1f   :  { %140 = vmatpush.bf16.msra.mxu0 %v343_v8 }
  0x20   :  { %226 = vmatpush.bf16.msra.mxu1 %v351_v14 }
  0x23   :  { %141 = vmatpush.bf16.msra.mxu0 %v342_v9 }
  0x24   :  { %227 = vmatpush.bf16.msra.mxu1 %v350_v15 }
  0x27   :  { %142 = vmatpush.bf16.msra.mxu0 %v341_v10 }
  0x28   :  { %228 = vmatpush.bf16.msra.mxu1 %v349_v16 }
  0x2b   :  { %143 = vmatpush.bf16.msra.mxu0 %v340_v11 }
  0x2c   :  { %229 = vmatpush.bf16.msra.mxu1 %v348_v17 }
  0x2e   :  { %144 = vmatmul.bf16.vlgmr.msra.gmra.mxu0 %v84_v13 }
  0xab   :  { %v145_v19 = vpop.f32.mrf.mxu0 }
  0xac   :  { %v146_v20 = vadd.f32 %v362_v18, %v145_v19 }
  0xae   :  { %v149_v21 = vmul.f32 0.5, %v146_v20 }
  0xb0   :  { %364 = vtanh.f32 %v149_v21 }
  0xb3   :  { %v147_v22 = vpop.f32.mrf.mxu0 }
  0xb6   :  { %v365_v23 = vpop.eup %364 }
  0xb7   :  { %v151_v24 = vmul.f32 0.5, %v365_v23 }
  0xb9   :  { %v152_v25 = vadd.f32 0.5, %v151_v24 }
  0xbb   :  { %v170_v26 = vpack.c.bf16 %v152_v25, %v152_v25 }
  0xbd   :  { %230 = vmatmul.bf16.vlgmr.msra.gmra.mxu1 %v170_v26 }
 0x13a   :  { %v231_v28 = vpop.f32.mrf.mxu1 }
 0x13b   :  { %v232_v29 = vadd.f32 %v363_v27, %v231_v28 }
 0x13d   :  { %235 = vmax.xlane.f32.xlu0 %v232_v29 }
 0x142   :  { %v233_v30 = vpop.f32.mrf.mxu1 }
 0x1b0   :  { %v236_v31 = vpop.xlane.xlu0 %235 }
 0x1b1   :  { %v237_v32 = vsub.f32 %v232_v29, %v236_v31 }
 0x1b3   :  { %v238_v33 = vmul.f32 1.442695, %v237_v32 }
 0x1b5   :  { %366 = vpow2.f32 %v238_v33 }
 0x1bb   :  { %v367_v34 = vpop.eup %366 }
 0x1bc   :  { %240 = vadd.xlane.f32.xlu0 %v367_v34 }
 0x22f   :  { %v241_v35 = vpop.xlane.xlu0 %240 }
 0x230   :  { %368 = vrcp.f32 %v241_v35  ;;  %v253_v39 = vand.u32 2147483648, %v241_v35  ;;  %v251_v41 = vand.u32 2147483647, %v241_v35  ;;  %vm247_vm1 = vweird.f32 %v241_v35 }
 0x232   :  { %v254_v43 = vor.u32 1.1754944e-38, %v253_v39  ;;  %vm252_vm3 = vcmp.eq.f32.partialorder %v251_v41, 8.507059e+37 }
 0x236   :  { %v369_v36 = vpop.eup %368 }
 0x237   :  { %v243_v37 = vmul.f32 %v369_v36, %v241_v35  ;;  %vm248_vm0 = vweird.f32 %v369_v36 }
 0x238   :  { %vm249_vm2 = vmor %vm247_vm1, %vm248_vm0 }
 0x239   :  { %v244_v38 = vsub.f32 1.0, %v243_v37 }
 0x23b   :  { %v245_v40 = vmul.f32 %v369_v36, %v244_v38 }
 0x23d   :  { %v246_v42 = vadd.f32 %v369_v36, %v245_v40 }
 0x23f   :  { %v250_v44 = vsel %vm249_vm2, %v369_v36, %v246_v42 }
 0x240   :  { %v255_v45 = vsel %vm252_vm3, %v254_v43, %v250_v44 }
 0x241   :  { %v256_v46 = vmul.f32 %v367_v34, %v255_v45 }
 0x243   :  { %257 = vst [vmem:[#allocation8] sm:$0xff] %v256_v46 }
 0x244   :  { %268 = dma.vmem_to_hbm [thread:$0]  %s264_s4, 128, %s266_s13, [#allocation4]  }
 0x245   :  { %470 = dma.done.wait [#allocation4], 128  }
 0x246   :  { %471 = vsyncadd [#allocation4], 4294967168 }
 0x247   :  { %273 = vsyncpa [#allocation3], 1 }
 0x248   :  { %274 = vsyncpa [#allocation6], 1 }
 0x249   :  { %275 = vsyncpa [#allocation4], 1 }

</bundles_post_ra>
